<compile_context>
chip_gen: v7x
topology: tpu7x:2x2x1
jax: 0.10.0
libtpu: 0.0.40
codegen_flags: <defaults>
</compile_context>

<pallas_src>
import functools

import jax
import jax.numpy as jnp
from jax.experimental import pallas as pl
from jax.experimental.pallas import tpu as pltpu


def _sgl_kernel(W, pred_ref, mask_ref, edges_ref, num_ref, den_ref):
    x = pred_ref[...]            # (C, TB, HW) f32
    m = mask_ref[...]            # (TB, HW)    f32
    HW = x.shape[-1]

    # Tiny per-pixel validity masks, broadcast over C and TB.
    right_ok = edges_ref[0:1, :]   # w < W-1
    left_ok = edges_ref[1:2, :]    # w > 0
    down_ok = edges_ref[2:3, :]    # h < H-1
    up_ok = edges_ref[3:4, :]      # h > 0

    # Neighbours on the flattened row-major (H*W) lane axis.  pltpu.roll is a
    # circular rotate (jnp.roll convention) with non-negative shift; every
    # position where the rotation wraps (image edge / row edge) is exactly the
    # position zeroed by the corresponding edge mask.
    x_right = pltpu.roll(x, shift=HW - 1, axis=2)   # x[j+1]
    x_left = pltpu.roll(x, shift=1, axis=2)         # x[j-1]
    x_down = pltpu.roll(x, shift=HW - W, axis=2)    # x[j+W]
    x_up = pltpu.roll(x, shift=W, axis=2)           # x[j-W]

    dx = 0.5 * (x_right * right_ok - x_left * left_ok)
    dy = 0.5 * (x_down * down_ok - x_up * up_ok)

    grad = jnp.sum(jnp.abs(dx) + jnp.abs(dy), axis=0)   # (TB, HW), sum over C
    err = m * grad

    num_ref[...] = jnp.broadcast_to(jnp.sum(err), (1, 1, 128))
    den_ref[...] = jnp.broadcast_to(
        jnp.sum((m > 0.0).astype(jnp.float32)), (1, 1, 128))


def _pick_batch_tile(n, bytes_per_image, budget_bytes):
    """Largest batch tile TB (dividing N) whose double-buffered blocks fit."""
    if 2 * n * bytes_per_image <= budget_bytes:
        return n
    limit = max(budget_bytes // (2 * bytes_per_image), 1)
    # Prefer a sublane-aligned (multiple of 8) second-minor block dim.
    for tb in range(min(n, limit), 0, -1):
        if n % tb == 0 and tb % 8 == 0:
            return tb
    for tb in range(min(n, limit), 0, -1):
        if n % tb == 0:
            return tb
    return 1


def squared_gradient_loss(pred, mask):
    """pred: (N, C, H, W) f32, mask: (N, 1, H, W) f32 -> scalar f32."""
    N, C, H, W = pred.shape
    HW = H * W

    # (C, N, HW): a free reshape for C == 1 (the only case the PyTorch module's
    # grouped conv accepts); a single transpose pass otherwise.
    pred_f = jnp.transpose(pred.reshape(N, C, HW).astype(jnp.float32), (1, 0, 2))
    mask_f = mask.reshape(N, HW).astype(jnp.float32)

    # Edge-validity masks on the flattened spatial axis (built once, tiny).
    w_idx = jnp.arange(HW, dtype=jnp.int32) % W
    h_idx = jnp.arange(HW, dtype=jnp.int32) // W
    edges = jnp.stack([
        (w_idx < W - 1).astype(jnp.float32),   # right neighbour valid
        (w_idx > 0).astype(jnp.float32),       # left neighbour valid
        (h_idx < H - 1).astype(jnp.float32),   # down neighbour valid
        (h_idx > 0).astype(jnp.float32),       # up neighbour valid
    ], axis=0)                                  # (4, HW)

    bytes_per_image = (C + 1) * HW * 4           # pred row(s) + mask row
    TB = _pick_batch_tile(N, bytes_per_image, budget_bytes=12 * 1024 * 1024)
    G = N // TB
    # TODO(synk): for single images too large for VMEM (e.g. 4K frames on v7x's
    # 64 MiB), add an H-tiling grid axis with a one-row halo.

    kernel = functools.partial(_sgl_kernel, W)
    num_part, den_part = pl.pallas_call(
        kernel,
        out_shape=(
            jax.ShapeDtypeStruct((G, 1, 128), jnp.float32),
            jax.ShapeDtypeStruct((G, 1, 128), jnp.float32),
        ),
        grid=(G,),
        in_specs=[
            pl.BlockSpec((C, TB, HW), lambda i: (0, i, 0)),
            pl.BlockSpec((TB, HW), lambda i: (i, 0)),
            pl.BlockSpec((4, HW), lambda i: (0, 0)),
        ],
        out_specs=(
            pl.BlockSpec((1, 1, 128), lambda i: (i, 0, 0)),
            pl.BlockSpec((1, 1, 128), lambda i: (i, 0, 0)),
        ),
        compiler_params=pltpu.CompilerParams(
            dimension_semantics=("parallel",),
        ),
    )(pred_f, mask_f, edges)

    num = jnp.sum(num_part[:, 0, 0])
    den = jnp.sum(den_part[:, 0, 0])
    # Note: den == 0 (mask all zero) yields NaN/Inf, same as the PyTorch module.
    return num / den


def _reference(pred, mask):
    xp = jnp.pad(pred, ((0, 0), (0, 0), (1, 1), (1, 1)))
    dx = 0.5 * (xp[:, :, 1:-1, 2:] - xp[:, :, 1:-1, :-2])
    dy = 0.5 * (xp[:, :, 2:, 1:-1] - xp[:, :, :-2, 1:-1])
    err = mask * (jnp.abs(dx).sum(1, keepdims=True)
                  + jnp.abs(dy).sum(1, keepdims=True))
    return err.sum() / (mask > 0).sum().astype(jnp.float32)


if __name__ == "__main__":
    key = jax.random.PRNGKey(0)
    k1, k2 = jax.random.split(key)
    # groups=C with a (1,1,3,3) filter in the PyTorch module requires C == 1.
    N, C, H, W = 2, 1, 16, 16
    pred = jax.random.normal(k1, (N, C, H, W), dtype=jnp.float32)
    mask = (jax.random.uniform(k2, (N, 1, H, W)) > 0.3).astype(jnp.float32)

    loss = squared_gradient_loss(pred, mask)
    jax.block_until_ready(loss)

    ref = _reference(pred, mask)
    assert jnp.allclose(loss, ref, rtol=1e-5, atol=1e-6), (loss, ref)
    print("KERNEL_OK")
</pallas_src>

<mosaic_0001>
module attributes {stable_mosaic.version = 11 : i64} {
  func.func @_sgl_kernel(%arg0: i32, %arg1: memref<1x2x256xf32, #tpu.memory_space<vmem>>, %arg2: memref<2x256xf32, #tpu.memory_space<vmem>>, %arg3: memref<4x256xf32, #tpu.memory_space<vmem>>, %arg4: memref<1x1x128xf32, #tpu.memory_space<vmem>>, %arg5: memref<1x1x128xf32, #tpu.memory_space<vmem>>) attributes {dimension_semantics = [#tpu.dimension_semantics<parallel>], iteration_bounds = array<i64: 1>, scalar_prefetch = 0 : i64, scratch_operands = 0 : i64, tpu.core_type = #tpu.core_type<tc>, window_params = [{transform_indices = @transform_0, window_bounds = array<i64: 1, 2, 256>}, {transform_indices = @transform_1, window_bounds = array<i64: 2, 256>}, {pipeline_mode = #tpu.pipeline_mode<synchronous>, transform_indices = @transform_2, window_bounds = array<i64: 4, 256>}, {transform_indices = @transform_3, window_bounds = array<i64: 1, 1, 128>}, {transform_indices = @transform_4, window_bounds = array<i64: 1, 1, 128>}]} {
    %c0 = arith.constant 0 : index
    %c0_0 = arith.constant 0 : index
    %c0_1 = arith.constant 0 : index
    %0 = vector.load %arg1[%c0, %c0_0, %c0_1] : memref<1x2x256xf32, #tpu.memory_space<vmem>>, vector<1x2x256xf32>
    %c0_2 = arith.constant 0 : index
    %c0_3 = arith.constant 0 : index
    %1 = vector.load %arg2[%c0_2, %c0_3] : memref<2x256xf32, #tpu.memory_space<vmem>>, vector<2x256xf32>
    %c0_4 = arith.constant 0 : index
    %c0_5 = arith.constant 0 : index
    %2 = vector.load %arg3[%c0_4, %c0_5] : memref<4x256xf32, #tpu.memory_space<vmem>>, vector<1x256xf32>
    %c1 = arith.constant 1 : index
    %c0_6 = arith.constant 0 : index
    %3 = vector.load %arg3[%c1, %c0_6] : memref<4x256xf32, #tpu.memory_space<vmem>>, vector<1x256xf32>
    %c2 = arith.constant 2 : index
    %c0_7 = arith.constant 0 : index
    %4 = vector.load %arg3[%c2, %c0_7] : memref<4x256xf32, #tpu.memory_space<vmem>>, vector<1x256xf32>
    %c3 = arith.constant 3 : index
    %c0_8 = arith.constant 0 : index
    %5 = vector.load %arg3[%c3, %c0_8] : memref<4x256xf32, #tpu.memory_space<vmem>>, vector<1x256xf32>
    %c255_i32 = arith.constant 255 : i32
    %6 = tpu.dynamic_rotate %0 by %c255_i32 dim 2 : vector<1x2x256xf32>, i32 -> vector<1x2x256xf32>
    %c1_i32 = arith.constant 1 : i32
    %7 = tpu.dynamic_rotate %0 by %c1_i32 dim 2 : vector<1x2x256xf32>, i32 -> vector<1x2x256xf32>
    %c240_i32 = arith.constant 240 : i32
    %8 = tpu.dynamic_rotate %0 by %c240_i32 dim 2 : vector<1x2x256xf32>, i32 -> vector<1x2x256xf32>
    %c16_i32 = arith.constant 16 : i32
    %9 = tpu.dynamic_rotate %0 by %c16_i32 dim 2 : vector<1x2x256xf32>, i32 -> vector<1x2x256xf32>
    %10 = vector.shape_cast %2 : vector<1x256xf32> to vector<1x1x256xf32>
    %11 = vector.broadcast %10 : vector<1x1x256xf32> to vector<1x2x256xf32>
    %12 = arith.mulf %6, %11 : vector<1x2x256xf32>
    %13 = vector.shape_cast %3 : vector<1x256xf32> to vector<1x1x256xf32>
    %14 = vector.broadcast %13 : vector<1x1x256xf32> to vector<1x2x256xf32>
    %15 = arith.mulf %7, %14 : vector<1x2x256xf32>
    %16 = arith.subf %12, %15 : vector<1x2x256xf32>
    %cst = arith.constant 5.000000e-01 : f32
    %17 = vector.broadcast %cst : f32 to vector<1x2x256xf32>
    %18 = arith.mulf %17, %16 : vector<1x2x256xf32>
    %19 = vector.shape_cast %4 : vector<1x256xf32> to vector<1x1x256xf32>
    %20 = vector.broadcast %19 : vector<1x1x256xf32> to vector<1x2x256xf32>
    %21 = arith.mulf %8, %20 : vector<1x2x256xf32>
    %22 = vector.shape_cast %5 : vector<1x256xf32> to vector<1x1x256xf32>
    %23 = vector.broadcast %22 : vector<1x1x256xf32> to vector<1x2x256xf32>
    %24 = arith.mulf %9, %23 : vector<1x2x256xf32>
    %25 = arith.subf %21, %24 : vector<1x2x256xf32>
    %cst_9 = arith.constant 5.000000e-01 : f32
    %26 = vector.broadcast %cst_9 : f32 to vector<1x2x256xf32>
    %27 = arith.mulf %26, %25 : vector<1x2x256xf32>
    %28 = math.absf %18 : vector<1x2x256xf32>
    %29 = math.absf %27 : vector<1x2x256xf32>
    %30 = arith.addf %28, %29 : vector<1x2x256xf32>
    %cst_10 = arith.constant dense<0.000000e+00> : vector<2x256xf32>
    %31 = vector.multi_reduction <add>, %30, %cst_10 [0] : vector<1x2x256xf32> to vector<2x256xf32>
    %32 = arith.mulf %1, %31 : vector<2x256xf32>
    %33 = vector.shape_cast %32 : vector<2x256xf32> to vector<1x2x256xf32>
    %cst_11 = arith.constant dense<0.000000e+00> : vector<1xf32>
    %34 = vector.multi_reduction <add>, %33, %cst_11 [1, 2] : vector<1x2x256xf32> to vector<1xf32>
    %35 = vector.shape_cast %34 : vector<1xf32> to vector<1x1x1xf32>
    %36 = vector.extract %35[0, 0, 0] : f32 from vector<1x1x1xf32>
    %37 = vector.broadcast %36 : f32 to vector<1x1x128xf32>
    %c0_12 = arith.constant 0 : index
    %c0_13 = arith.constant 0 : index
    %c0_14 = arith.constant 0 : index
    %38 = vector.load %arg4[%c0_12, %c0_13, %c0_14] : memref<1x1x128xf32, #tpu.memory_space<vmem>>, vector<1x1x128xf32>
    tpu.vector_store %arg4[%c0_12, %c0_13, %c0_14], %37 {strides = array<i32>} : memref<1x1x128xf32, #tpu.memory_space<vmem>>, vector<1x1x128xf32>,
    %cst_15 = arith.constant 0.000000e+00 : f32
    %39 = vector.broadcast %cst_15 : f32 to vector<2x256xf32>
    %40 = arith.cmpf ogt, %1, %39 : vector<2x256xf32>
    %41 = arith.extui %40 : vector<2x256xi1> to vector<2x256xi32>
    %42 = arith.sitofp %41 : vector<2x256xi32> to vector<2x256xf32>
    %43 = vector.shape_cast %42 : vector<2x256xf32> to vector<1x2x256xf32>
    %cst_16 = arith.constant dense<0.000000e+00> : vector<1xf32>
    %44 = vector.multi_reduction <add>, %43, %cst_16 [1, 2] : vector<1x2x256xf32> to vector<1xf32>
    %45 = vector.shape_cast %44 : vector<1xf32> to vector<1x1x1xf32>
    %46 = vector.extract %45[0, 0, 0] : f32 from vector<1x1x1xf32>
    %47 = vector.broadcast %46 : f32 to vector<1x1x128xf32>
    %c0_17 = arith.constant 0 : index
    %c0_18 = arith.constant 0 : index
    %c0_19 = arith.constant 0 : index
    %48 = vector.load %arg5[%c0_17, %c0_18, %c0_19] : memref<1x1x128xf32, #tpu.memory_space<vmem>>, vector<1x1x128xf32>
    tpu.vector_store %arg5[%c0_17, %c0_18, %c0_19], %47 {strides = array<i32>} : memref<1x1x128xf32, #tpu.memory_space<vmem>>, vector<1x1x128xf32>,
    return
  }
  func.func @transform_0(%arg0: i32) -> (i32, i32, i32) {
    %c0_i32 = arith.constant 0 : i32
    %c0_i32_0 = arith.constant 0 : i32
    %c0_i32_1 = arith.constant 0 : i32
    return %c0_i32, %arg0, %c0_i32_0 : i32, i32, i32
  }
  func.func @transform_1(%arg0: i32) -> (i32, i32) {
    %c0_i32 = arith.constant 0 : i32
    %c0_i32_0 = arith.constant 0 : i32
    return %arg0, %c0_i32 : i32, i32
  }
  func.func @transform_2(%arg0: i32) -> (i32, i32) {
    %c0_i32 = arith.constant 0 : i32
    %c0_i32_0 = arith.constant 0 : i32
    %c0_i32_1 = arith.constant 0 : i32
    return %c0_i32, %c0_i32_0 : i32, i32
  }
  func.func @transform_3(%arg0: i32) -> (i32, i32, i32) {
    %c0_i32 = arith.constant 0 : i32
    %c0_i32_0 = arith.constant 0 : i32
    %c0_i32_1 = arith.constant 0 : i32
    return %arg0, %c0_i32, %c0_i32_0 : i32, i32, i32
  }
  func.func @transform_4(%arg0: i32) -> (i32, i32, i32) {
    %c0_i32 = arith.constant 0 : i32
    %c0_i32_0 = arith.constant 0 : i32
    %c0_i32_1 = arith.constant 0 : i32
    return %arg0, %c0_i32, %c0_i32_0 : i32, i32, i32
  }
}

</mosaic_0001>

<bundles_post_ra>
// kernel: tpu_custom_call.1
= control target key start
LH: loop header
LB: loop body
LE: loop exit
PB: predicated region body
PF: predicated region fallthrough
CT: control target
= control target key end

     0   :  { %10 = vsyncpa [#allocation3], 0  ;;  %s525_s0 = inlined_call_operand.hbm [shape: f32[1,2,256], index: 0, kind: input, shape index: {}]   ;;  %s526_s1 = inlined_call_operand.hbm [shape: f32[2,256], index: 1, kind: input, shape index: {}]   ;;  %s527_s2 = inlined_call_operand.hbm [shape: f32[4,256], index: 2, kind: input, shape index: {}]   ;;  %s528_s3 = inlined_call_operand.hbm [shape: f32[1,1,128], index: 3, kind: output, shape index: {0}]   ;;  %s529_s4 = inlined_call_operand.hbm [shape: f32[1,1,128], index: 4, kind: output, shape index: {1}]  }
   0x1   :  { %11 = vsyncpa [#allocation6], 0 }
   0x2   :  { %12 = vsyncpa [#allocation4], 0 }
   0x3   :  { %13 = vsyncpa [#allocation10], 0  ;;  %s402_s15 = smov [#allocation5]   ;;  %s403_s17 = smov [#allocation2]  }
   0x4   :  { %s30_s16 = sshll.u32 %s402_s15, 4  ;;  %s20_s18 = sshll.u32 %s403_s17, 4  ;;  %s31_s16 = int_to_ptr.vmem [resolvable:$true] %s30_s16  ;;  %s21_s18 = int_to_ptr.vmem [resolvable:$true] %s20_s18 }
   0x5   :  { %s284_s21 = scalar_lea.hbm %s526_s1, 64 }
   0x6   :  { %p285_p0 = scmp.ne.s32.totalorder %s526_s1, %s284_s21  ;;  %p288_p1 = scmp.lt.u32.totalorder %s284_s21, %s526_s1 }
   0x8   :  { %p290_p2 = pnand %p288_p1, %p285_p0 }
   0xa   :  { %293 = shalt.err (!%p290_p2)
}
   0xb   :  { %s294_s26 = scalar_lea.vmem %s31_s16, 64  ;;  %p299_p4 = scmp.lt.s32.totalorder %s31_s16, %s31_s16 }
   0xc   :  { %p295_p3 = scmp.ne.s32.totalorder %s31_s16, %s294_s26  ;;  %p300_p5 = scmp.lt.s32.totalorder %s294_s26, %s294_s26 }
   0xe   :  { %p301_p6 = por %p300_p5, %p299_p4 }
  0x10   :  { %p302_p7 = pnand %p301_p6, %p295_p3 }
  0x12   :  { %305 = shalt.err (!%p302_p7)
}
  0x13   :  { %33 = dma.hbm_to_vmem [thread:$0]  %s526_s1, 64, %s31_s16, [#allocation6]  }
  0x14   :  { %s306_s5 = scalar_lea.hbm %s525_s0, 64 }
  0x15   :  { %p307_p8 = scmp.ne.s32.totalorder %s525_s0, %s306_s5  ;;  %p310_p9 = scmp.lt.u32.totalorder %s306_s5, %s525_s0 }
  0x17   :  { %p312_p10 = pnand %p310_p9, %p307_p8 }
  0x19   :  { %315 = shalt.err (!%p312_p10)
}
  0x1a   :  { %s316_s10 = scalar_lea.vmem %s21_s18, 64  ;;  %p321_p12 = scmp.lt.s32.totalorder %s21_s18, %s21_s18 }
  0x1b   :  { %p317_p11 = scmp.ne.s32.totalorder %s21_s18, %s316_s10  ;;  %p322_p13 = scmp.lt.s32.totalorder %s316_s10, %s316_s10 }
  0x1d   :  { %p323_p0 = por %p322_p13, %p321_p12 }
  0x1f   :  { %p324_p1 = pnand %p323_p0, %p317_p11 }
  0x21   :  { %327 = shalt.err (!%p324_p1)
}
  0x22   :  { %23 = dma.hbm_to_vmem [thread:$0]  %s525_s0, 64, %s21_s18, [#allocation3]  }
  0x23   :  { %s404_s12 = smov [#allocation7]   ;;  %s328_s16 = scalar_lea.hbm %s527_s2, 128 }
  0x24   :  { %s40_s13 = sshll.u32 %s404_s12, 4  ;;  %p329_p2 = scmp.ne.s32.totalorder %s527_s2, %s328_s16  ;;  %s41_s13 = int_to_ptr.vmem [resolvable:$true] %s40_s13 }
  0x25   :  { %p332_p3 = scmp.lt.u32.totalorder %s328_s16, %s527_s2 }
  0x27   :  { %p334_p4 = pnand %p332_p3, %p329_p2 }
  0x29   :  { %337 = shalt.err (!%p334_p4)
}
  0x2a   :  { %s338_s22 = scalar_lea.vmem %s41_s13, 128  ;;  %p343_p6 = scmp.lt.s32.totalorder %s41_s13, %s41_s13 }
  0x2b   :  { %p339_p5 = scmp.ne.s32.totalorder %s41_s13, %s338_s22  ;;  %p344_p7 = scmp.lt.s32.totalorder %s338_s22, %s338_s22 }
  0x2d   :  { %p345_p8 = por %p344_p7, %p343_p6 }
  0x2f   :  { %p346_p9 = pnand %p345_p8, %p339_p5 }
  0x31   :  { %349 = shalt.err (!%p346_p9)
}
  0x32   :  { %43 = dma.hbm_to_vmem [thread:$0]  %s527_s2, 128, %s41_s13, [#allocation6]  }
  0x33   :  { %394 = dma.done.wait [#allocation3], 64  }
  0x34   :  { %395 = vsyncadd [#allocation3], 4294967232 }
  0x35   :  { %396 = dma.done.wait [#allocation6], 192  }
  0x36   :  { %397 = vsyncadd [#allocation6], 4294967104  ;;  %v267_v0 = vld.sshfl [vmem:[#allocation2] sm:$0x33 pattern:$0x76325410]  ;;  %v77_v4 = vlaneseq }
  0x37   :  { %s405_s23 = smov 1   ;;  %s406_s24 = smov 127   ;;  %v70_v1 = vcombine.high %v267_v0, %v267_v0  ;;  %v409_v2 = vmov 1983009808   ;;  %v474_v5 = vld [vmem:[#allocation5] sm:$0xf] }
  0x38   :  { %82 = vrot.lane.b32.xlu1 %v267_v0, %s405_s23  ;;  %73 = vrot.lane.b32.xlu0 %v267_v0, %s406_s24  ;;  %s407_s25 = smov 112   ;;  %s408_s26 = smov 16   ;;  %v175_v3 = vunpack.c.l.s4 %v409_v2  ;;  %v105_v7 = vshrl.u32 %v77_v4, 7  ;;  %vm209_vm0 = vcmp.gt.f32.partialorder %v474_v5, 0.0  ;;  %v410_v9 = vmov 0.0  }
  0x39   :  { %v268_v10 = vsel %vm209_vm0, 1.0, %v410_v9  ;;  %vm194_vm1 = vcmask 1041408   ;;  %v78_v16 = vand.u32 127, %v77_v4  ;;  %v57_v19 = vld [vmem:[#allocation7 + $0x1] ss:$4 sm:$0x3] }
  0x3a   :  { %v176_v6 = vunpack.c.0.s8 %v175_v3  ;;  %v106_v17 = vsub.s32 0, %v105_v7  ;;  %v110_v18 = vsub.s32 1, %v105_v7  ;;  %v59_v24 = vld [vmem:[#allocation7 + $0x2] ss:$4 sm:$0x3]  ;;  %s411_s2 = smov [#allocation8]  }
  0x3b   :  { %vm86_vm2 = vcmp.lt.s32.totalorder %v78_v16, 1  ;;  %v55_v25 = vld [vmem:[#allocation7] ss:$4 sm:$0x3]  ;;  %vm93_vm3 = vcmp.lt.s32.totalorder %v78_v16, 112  ;;  %vm79_vm4 = vcmp.lt.s32.totalorder %v78_v16, 127 }
  0x3c   :  { %89 = vrot.lane.b32.xlu0 %v267_v0, %s407_s25  ;;  %84 = vrot.lane.b32.xlu1 %v70_v1, %s405_s23  ;;  %v477_v8 = vsub.s32 %v176_v6, %v105_v7  ;;  %v120_v22 = vrot.slane %v57_v19, %v106_v17  ;;  %v124_v23 = vrot.slane %v57_v19, %v110_v18  ;;  %v61_v32 = vld [vmem:[#allocation7 + $0x3] ss:$4 sm:$0x3]  ;;  %vm100_vm5 = vcmp.lt.s32.totalorder %v78_v16, 16  ;;  %s243_s27 = sshll.u32 %s411_s2, 4  ;;  %s412_s28 = smov [#allocation9]   ;;  %s244_s27 = int_to_ptr.vmem [resolvable:$true] %s243_s27 }
  0x3d   :  { %v137_v30 = vrot.slane %v59_v24, %v106_v17  ;;  %v141_v31 = vrot.slane %v59_v24, %v110_v18  ;;  %v107_v35 = vrot.slane %v55_v25, %v106_v17  ;;  %v111_v36 = vrot.slane %v55_v25, %v110_v18  ;;  %s253_s29 = sshll.u32 %s412_s28, 4  ;;  %s350_s6 = scalar_lea.vmem %s244_s27, 16  ;;  %s493_s29 = int_to_ptr.vmem [resolvable:$true] %s253_s29 }
  0x3e   :  { %v219_v11 = vrot.slane %v268_v10, %v477_v8  ;;  %v150_v39 = vrot.slane %v61_v32, %v106_v17  ;;  %v154_v40 = vrot.slane %v61_v32, %v110_v18  ;;  %p351_p10 = scmp.ne.s32.totalorder %s244_s27, %s350_s6  ;;  %s354_s7 = scalar_lea.vmem %s244_s27, 32 }
  0x3f   :  { %p355_p11 = scmp.lt.s32.totalorder %s244_s27, %s244_s27  ;;  %p356_p12 = scmp.lt.s32.totalorder %s354_s7, %s350_s6 }
  0x40   :  { %91 = vrot.lane.b32.xlu1 %v70_v1, %s407_s25  ;;  %75 = vrot.lane.b32.xlu0 %v70_v1, %s406_s24  ;;  %v220_v12 = vcombine.high %v219_v11, %v219_v11  ;;  %v223_v13 = vsel %vm194_vm1, %v219_v11, 0.0 }
  0x41   :  { %p357_p13 = por %p356_p12, %p355_p11 }
  0x42   :  { %v224_v14 = vsel %vm194_vm1, %v220_v12, 0.0 }
  0x43   :  { %v225_v15 = vadd.f32 %v224_v14, %v223_v13  ;;  %p358_p0 = pnand %p357_p13, %p351_p10 }
  0x44   :  { %98 = vrot.lane.b32.xlu1 %v70_v1, %s408_s26  ;;  %96 = vrot.lane.b32.xlu0 %v267_v0, %s408_s26 }
  0x68   :  { %226 = vadd.xlane.f32.xlu1 %v225_v15 }
  0xaa   :  { %v83_v20 = vpop.permute.xlu1 %82  ;;  %v74_v21 = vpop.permute.xlu0 %73 }
  0xae   :  { %v90_v26 = vpop.permute.xlu0 %89  ;;  %v85_v27 = vpop.permute.xlu1 %84 }
  0xaf   :  { %v87_v28 = vsel %vm86_vm2, %v83_v20, %v85_v27  ;;  %v88_v29 = vsel %vm86_vm2, %v85_v27, %v83_v20 }
  0xb0   :  { %v127_v33 = vmul.f32 %v120_v22, %v88_v29  ;;  %v128_v34 = vmul.f32 %v124_v23, %v87_v28 }
  0xb2   :  { %v92_v37 = vpop.permute.xlu1 %91  ;;  %v76_v38 = vpop.permute.xlu0 %75 }
  0xb3   :  { %v94_v41 = vsel %vm93_vm3, %v90_v26, %v92_v37  ;;  %v95_v42 = vsel %vm93_vm3, %v92_v37, %v90_v26  ;;  %v80_v43 = vsel %vm79_vm4, %v74_v21, %v76_v38  ;;  %v81_v44 = vsel %vm79_vm4, %v76_v38, %v74_v21 }
  0xb4   :  { %v144_v45 = vmul.f32 %v137_v30, %v94_v41  ;;  %v145_v46 = vmul.f32 %v141_v31, %v95_v42  ;;  %v114_v47 = vmul.f32 %v107_v35, %v80_v43  ;;  %v115_v48 = vmul.f32 %v111_v36, %v81_v44 }
  0xb6   :  { %v129_v49 = vsub.f32 %v114_v47, %v127_v33  ;;  %v130_v50 = vsub.f32 %v115_v48, %v128_v34  ;;  %v99_v51 = vpop.permute.xlu1 %98  ;;  %v97_v52 = vpop.permute.xlu0 %96 }
  0xb7   :  { %v101_v53 = vsel %vm100_vm5, %v97_v52, %v99_v51  ;;  %v102_v54 = vsel %vm100_vm5, %v99_v51, %v97_v52 }
  0xb8   :  { %v157_v55 = vmul.f32 %v150_v39, %v102_v54  ;;  %v158_v56 = vmul.f32 %v154_v40, %v101_v53  ;;  %v131_v57 = vmul.f32 0.5, %v129_v49  ;;  %v132_v58 = vmul.f32 0.5, %v130_v50 }
  0xba   :  { %v159_v59 = vsub.f32 %v144_v45, %v157_v55  ;;  %v160_v60 = vsub.f32 %v145_v46, %v158_v56  ;;  %v163_v63 = vand.u32 2147483647, %v131_v57  ;;  %v164_v0 = vand.u32 2147483647, %v132_v58 }
  0xbc   :  { %v161_v61 = vmul.f32 0.5, %v159_v59  ;;  %v162_v62 = vmul.f32 0.5, %v160_v60 }
  0xbe   :  { %v165_v1 = vand.u32 2147483647, %v161_v61  ;;  %v166_v2 = vand.u32 2147483647, %v162_v62 }
  0xc0   :  { %v167_v3 = vadd.f32 %v165_v1, %v163_v63  ;;  %v168_v4 = vadd.f32 %v166_v2, %v164_v0 }
  0xc2   :  { %v173_v6 = vcombine.low %v167_v3, %v168_v4 }
  0xc4   :  { %v180_v7 = vrot.slane %v173_v6, %v477_v8 }
  0xc6   :  { %v182_v9 = vmul.f32 %v180_v7, %v474_v5 }
  0xc8   :  { %v190_v10 = vrot.slane %v182_v9, %v477_v8 }
  0xca   :  { %v191_v11 = vcombine.high %v190_v10, %v190_v10  ;;  %v195_v12 = vsel %vm194_vm1, %v190_v10, 0.0 }
  0xcc   :  { %v196_v13 = vsel %vm194_vm1, %v191_v11, 0.0 }
  0xcd   :  { %v197_v14 = vadd.f32 %v196_v13, %v195_v12 }
  0xcf   :  { %198 = vadd.xlane.f32.xlu0 %v197_v14 }
  0xf5   :  { %v227_v15 = vpop.xlane.xlu1 %226 }
  0xf6   :  { %v228_v16 = vrot.slane %v227_v15, 4 }
  0xf8   :  { %v229_v17 = vadd.f32 %v228_v16, %v227_v15 }
  0xfa   :  { %v230_v18 = vrot.slane %v229_v17, 2 }
  0xfc   :  { %v231_v22 = vadd.f32 %v230_v18, %v229_v17 }
  0xfe   :  { %v232_v5 = vrot.slane %v231_v22, 1 }
 0x100   :  { %v233_v26 = vadd.f32 %v232_v5, %v231_v22 }
 0x15c   :  { %v199_v19 = vpop.xlane.xlu0 %198 }
 0x15d   :  { %v200_v20 = vrot.slane %v199_v19, 4 }
 0x15f   :  { %v201_v21 = vadd.f32 %v200_v20, %v199_v19 }
 0x161   :  { %v202_v23 = vrot.slane %v201_v21, 2 }
 0x163   :  { %v203_v24 = vadd.f32 %v202_v23, %v201_v21 }
 0x165   :  { %v204_v25 = vrot.slane %v203_v24, 1 }
 0x167   :  { %v205_v8 = vadd.f32 %v204_v25, %v203_v24 }
 0x169   :  { %269 = vpush %v205_v8 }
 0x16a   :  { %271 = vpush %v233_v26 }
 0x19a   :  { %s270_s30 = spop %269 }
 0x19b   :  { %v207_v27 = vstv %s270_s30  ;;  %s272_s5 = spop %271 }
 0x19c   :  { %208 = vst [vmem:[#allocation8] sm:$0x1] %v207_v27  ;;  %v235_v28 = vstv %s272_s5 }
 0x19d   :  { %236 = vst [vmem:[#allocation9] sm:$0x1] %v235_v28 }
 0x19e   :  { %361 = shalt.err (!%p358_p0)
}
 0x19f   :  { %s362_s10 = scalar_lea.hbm %s528_s3, 16 }
 0x1a0   :  { %p363_p1 = scmp.ne.s32.totalorder %s528_s3, %s362_s10  ;;  %p366_p2 = scmp.lt.u32.totalorder %s362_s10, %s528_s3 }
 0x1a2   :  { %p368_p3 = pnand %p366_p2, %p363_p1 }
 0x1a4   :  { %371 = shalt.err (!%p368_p3)
}
 0x1a5   :  { %246 = dma.vmem_to_hbm [thread:$0]  %s244_s27, 16, %s528_s3, [#allocation4]  }
 0x1a6   :  { %s372_s16 = scalar_lea.vmem %s493_s29, 16  ;;  %s376_s17 = scalar_lea.vmem %s493_s29, 32 }
 0x1a7   :  { %p373_p4 = scmp.ne.s32.totalorder %s493_s29, %s372_s16  ;;  %p377_p5 = scmp.lt.s32.totalorder %s493_s29, %s493_s29 }
 0x1a8   :  { %p378_p6 = scmp.lt.s32.totalorder %s376_s17, %s372_s16 }
 0x1aa   :  { %p379_p7 = por %p378_p6, %p377_p5 }
 0x1ac   :  { %p380_p8 = pnand %p379_p7, %p373_p4 }
 0x1ae   :  { %383 = shalt.err (!%p380_p8)
}
 0x1af   :  { %s384_s21 = scalar_lea.hbm %s529_s4, 16 }
 0x1b0   :  { %p385_p9 = scmp.ne.s32.totalorder %s529_s4, %s384_s21  ;;  %p388_p10 = scmp.lt.u32.totalorder %s384_s21, %s529_s4 }
 0x1b2   :  { %p390_p11 = pnand %p388_p10, %p385_p9 }
 0x1b4   :  { %393 = shalt.err (!%p390_p11)
}
 0x1b5   :  { %256 = dma.vmem_to_hbm [thread:$0]  %s493_s29, 16, %s529_s4, [#allocation10]  }
 0x1b6   :  { %398 = dma.done.wait [#allocation4], 16  }
 0x1b7   :  { %399 = vsyncadd [#allocation4], 4294967280 }
 0x1b8   :  { %400 = dma.done.wait [#allocation10], 16  }
 0x1b9   :  { %401 = vsyncadd [#allocation10], 4294967280 }
 0x1ba   :  { %263 = vsyncpa [#allocation3], 1 }
 0x1bb   :  { %264 = vsyncpa [#allocation6], 1 }
 0x1bc   :  { %265 = vsyncpa [#allocation4], 1 }
 0x1bd   :  { %266 = vsyncpa [#allocation10], 1 }

</bundles_post_ra>
